<compile_context>
chip_gen: v6e
topology: v6e:2x2x1
jax: 0.10.0
libtpu: 0.0.40
codegen_flags: <defaults>
</compile_context>

<pallas_src>
import functools

import jax
import jax.numpy as jnp
from jax.experimental import pallas as pl
from jax.experimental.pallas import tpu as pltpu

_F32_MAX = float(jnp.finfo(jnp.float32).max)

# SMEM coefficient layout (one row per batch element, f32):
#   [0]           : w * sqrt(alpha_cumprod)                  (scales encoder matmul)
#   [4 + 4c + k]  : A[c,k] = w*(sqrt(1-a)*wu4[c,k] - delta)  (noise channel mix)
#   [20 + 4c + k] : G[c,k] = w*gs*wu_cc[c,k]                 (c_concat channel mix)
#   [36 + c]      : C[c]   = w*(bias_eff[c] + sqrt(a)*eb[c]) (all biases, CFG-combined)
_COEF_WIDTH = 40


# ----------------------------------------------------------------------------
# Fused kernel: encoder matmul + add_noise + U-Net surrogate + CFG + nan_to_num
# + SDS reduction, tiled over (batch, spatial).
# ----------------------------------------------------------------------------
def _sds_kernel(coef_ref, wf_ref, patch_ref, noise_ref, cc_ref, o_ref, acc_ref):
    b = pl.program_id(0)
    j = pl.program_id(1)

    @pl.when(j == 0)
    def _():
        acc_ref[...] = jnp.zeros_like(acc_ref)

    # Fused (VAE patch encoder o U-Net 4x4 latent mixer): one bf16 MXU matmul.
    mixbase = jnp.dot(wf_ref[...], patch_ref[0],
                      preferred_element_type=jnp.float32)        # [4, tn] f32
    noise = noise_ref[0]                                         # [4, tn] f32
    cc = cc_ref[...]                                             # [4, tn] f32

    csa = coef_ref[b, 0]
    tot = jnp.zeros((1, mixbase.shape[1]), jnp.float32)
    for c in range(4):                                           # 4 output channels
        g = csa * mixbase[c:c + 1, :]
        for k in range(4):                                       # VPU FMAs, SMEM scalars
            g = g + coef_ref[b, 4 + 4 * c + k] * noise[k:k + 1, :]
            g = g + coef_ref[b, 20 + 4 * c + k] * cc[k:k + 1, :]
        g = g + coef_ref[b, 36 + c]
        # torch.nan_to_num: nan -> 0, +/-inf -> +/-float32 max
        g = jnp.where(jnp.isnan(g), 0.0, g)
        g = jnp.clip(g, -_F32_MAX, _F32_MAX)
        tot = tot + g * g
    acc_ref[...] += tot                                          # vector accumulator

    @pl.when(j == pl.num_programs(1) - 1)
    def _():
        # single cross-lane (XLU) reduce per batch, at the very end
        o_ref[...] = jnp.sum(acc_ref[...]).reshape(1, 1, 1)


def _pick_tile(ll):
    """Largest spatial tile <= 2048 lanes that divides LL (multiple of 128)."""
    if ll <= 2048:
        return ll
    tn = 2048
    while tn >= 128 and ll % tn != 0:
        tn //= 2
    return tn if tn >= 128 and ll % tn == 0 else ll


def fused_sds_pallas(coef, w_fused, patches, noise, cc):
    """coef [B,40] f32 (SMEM), w_fused [4,192] bf16, patches [B,192,LL] bf16,
    noise [B,4,LL] f32, cc [4,LL] f32 -> per-batch partial SDS sums [B,1,1]."""
    B, K, LL = patches.shape
    tn = _pick_tile(LL)
    nt = LL // tn
    return pl.pallas_call(
        _sds_kernel,
        out_shape=jax.ShapeDtypeStruct((B, 1, 1), jnp.float32),
        grid=(B, nt),
        in_specs=[
            pl.BlockSpec(memory_space=pltpu.MemorySpace.SMEM),    # per-batch scalars
            pl.BlockSpec((4, K), lambda b, j: (0, 0)),            # fused weight (resident)
            pl.BlockSpec((1, K, tn), lambda b, j: (b, 0, j)),     # bf16 patches (dominant DMA)
            pl.BlockSpec((1, 4, tn), lambda b, j: (b, 0, j)),     # noise
            pl.BlockSpec((4, tn), lambda b, j: (0, j)),           # c_concat (batch-invariant)
        ],
        out_specs=pl.BlockSpec((1, 1, 1), lambda b, j: (b, 0, 0)),
        scratch_shapes=[pltpu.VMEM((1, tn), jnp.float32)],
        compiler_params=pltpu.CompilerParams(
            dimension_semantics=("parallel", "arbitrary"),        # batch over v7x's 2 TCs
            vmem_limit_bytes=32 * 1024 * 1024),
    )(coef, w_fused, patches, noise, cc)


# ----------------------------------------------------------------------------
# StableZero123 forward: XLA glue + parameter-only folds, one Pallas kernel.
# ----------------------------------------------------------------------------
def stable_zero123_forward(params, rgb, elevation, azimuth, rng, *,
                           img_dim, guidance_scale, cond_elevation_deg,
                           cond_azimuth_deg, alphas_cumprod, min_step, max_step):
    B = rgb.shape[0]
    H, W = img_dim
    L = H // 8                       # VAE downsamples by 8
    LL = L * L
    gs = float(guidance_scale)

    # rgb [B,H,W,C] -> NCHW, bilinear resize.
    # TODO(synk): F.interpolate(align_corners=False) approximated by jax.image.resize.
    rgb_BCHW = jnp.transpose(rgb, (0, 3, 1, 2))
    rgb_resized = jax.image.resize(rgb_BCHW, (B, 3, H, W), method="bilinear")

    # 8x8 patch extraction -> [B,192,L*L] in bf16 (imgs*2-1 and the 0.18215 latent
    # scale are folded into the encoder weights) -> half-width dominant HBM stream.
    patches = rgb_resized.reshape(B, 3, L, 8, L, 8)
    patches = jnp.transpose(patches, (0, 1, 3, 5, 2, 4)).reshape(B, 192, LL)
    patches = patches.astype(jnp.bfloat16)

    # ---- get_cond: camera-delta embedding T ---------------------------------
    d2r = jnp.pi / 180.0
    az_rel = (azimuth - cond_azimuth_deg) * d2r
    T = jnp.stack(
        [(90.0 - elevation - (90.0 - cond_elevation_deg)) * d2r,
         jnp.sin(az_rel), jnp.cos(az_rel),
         jnp.full_like(elevation, (90.0 - cond_elevation_deg) * d2r)],
        axis=-1)                                                         # [B,4]

    # ---- timestep + noise ----------------------------------------------------
    k_t, k_n = jax.random.split(rng)
    t = jax.random.randint(k_t, (B,), min_step, max_step + 1)
    noise = jax.random.normal(k_n, (B, 4, LL), jnp.float32)

    ac_t = alphas_cumprod[t]
    sa = jnp.sqrt(ac_t)                       # sqrt(alpha_cumprod[t])
    sb = jnp.sqrt(1.0 - ac_t)                 # sqrt(1 - alpha_cumprod[t])
    w_b = 1.0 - ac_t                          # SDS weight w(t)

    # ---- parameter-only algebraic folds (tiny, f32, done by XLA once) --------
    # cc_projection: clip_emb@w_cross == (c_crossattn@w_cc[:768]+b_cc)@w_cross
    #                                    + T @ (w_cc[768:]@w_cross)
    # TODO(synk): CLIP image conditioning comes from synthesized c_crossattn.
    w_cc, w_cross = params["w_cc"], params["w_cross"]
    const4 = (params["c_crossattn"][:, 0, :] @ w_cc[:768]
              + params["b_cc"][None, :]) @ w_cross                      # [1,4]
    m44 = w_cc[768:] @ w_cross                                          # [4,4]
    bias_core = T @ m44 + const4                                        # [B,4]
    ts = (0.1 * t.astype(jnp.float32) / 1000.0)[:, None]                # [B,1]
    common = params["b_cross"][None, :] + ts                            # [B,4]
    bias_eff = common + gs * bias_core        # CFG-combined conditioning bias

    # surrogate U-Net channel mixer, split into latent / c_concat halves.
    # TODO(synk): model.apply_model (full latent-diffusion U-Net) is replaced by a
    #             deterministic channel-mixing surrogate (w_unet).
    wuT = jnp.transpose(params["w_unet"])                               # [4,8]
    wu4 = wuT[:, :4]                                                    # latent mix
    wug = gs * wuT[:, 4:]                                               # CFG-scaled cc mix

    # surrogate VAE encoder with imgs*2-1, 0.18215 and the U-Net latent mix all
    # folded into one [4,192] bf16 weight (single MXU matmul in-kernel).
    # TODO(synk): pretrained VAE encoder replaced by an 8x8 patch-linear surrogate.
    w_enc = params["w_enc"]                                             # [192,4]
    w2T = (2.0 * 0.18215) * jnp.transpose(w_enc)                        # [4,192]
    b_enc = -0.18215 * jnp.sum(w_enc, axis=0)                           # [4]
    w_fused = (wu4 @ w2T).astype(jnp.bfloat16)                          # [4,192]
    eb = wu4 @ b_enc                                                    # [4]

    # per-batch scalar coefficients -> SMEM
    eye4 = jnp.eye(4, dtype=jnp.float32)
    csa = (w_b * sa)[:, None]                                                # [B,1]
    A = w_b[:, None, None] * (sb[:, None, None] * wu4[None] - eye4[None])    # [B,4,4]
    G = w_b[:, None, None] * wug[None]                                       # [B,4,4]
    C = w_b[:, None] * (bias_eff + sa[:, None] * eb[None, :])                # [B,4]
    coef = jnp.concatenate(
        [csa, jnp.zeros((B, 3), jnp.float32),
         A.reshape(B, 16), G.reshape(B, 16), C], axis=1)                     # [B,40]

    cc = params["c_concat"].reshape(4, LL)

    partials = fused_sds_pallas(coef, w_fused, patches, noise, cc)           # [B,1,1]
    return 0.5 * jnp.sum(partials) / B


# ----------------------------------------------------------------------------
# Pure-JAX f32 reference (no folds, no bf16) for a correctness check.
# ----------------------------------------------------------------------------
def _reference_loss(params, rgb, elevation, azimuth, rng, *, img_dim,
                    guidance_scale, cond_elevation_deg, cond_azimuth_deg,
                    alphas_cumprod, min_step, max_step):
    B = rgb.shape[0]
    H, W = img_dim
    L = H // 8
    LL = L * L
    rgb_BCHW = jnp.transpose(rgb, (0, 3, 1, 2))
    rgb_resized = jax.image.resize(rgb_BCHW, (B, 3, H, W), method="bilinear")
    patches = jnp.transpose(rgb_resized.reshape(B, 3, L, 8, L, 8),
                            (0, 1, 3, 5, 2, 4)).reshape(B, 192, LL)
    latents = 0.18215 * jnp.einsum("ck,bkn->bcn",
                                   jnp.transpose(params["w_enc"]),
                                   patches * 2.0 - 1.0)

    d2r = jnp.pi / 180.0
    az_rel = (azimuth - cond_azimuth_deg) * d2r
    T = jnp.stack(
        [(90.0 - elevation - (90.0 - cond_elevation_deg)) * d2r,
         jnp.sin(az_rel), jnp.cos(az_rel),
         jnp.full_like(elevation, (90.0 - cond_elevation_deg) * d2r)], axis=-1)

    k_t, k_n = jax.random.split(rng)
    t = jax.random.randint(k_t, (B,), min_step, max_step + 1)
    noise = jax.random.normal(k_n, (B, 4, LL), jnp.float32)

    ac_t = alphas_cumprod[t]
    latn = (jnp.sqrt(ac_t)[:, None, None] * latents
            + jnp.sqrt(1.0 - ac_t)[:, None, None] * noise)

    clip_emb = (params["c_crossattn"][:, 0, :] @ params["w_cc"][:768]
                + T @ params["w_cc"][768:] + params["b_cc"][None, :])
    bias_core = clip_emb @ params["w_cross"]
    ts = (0.1 * t.astype(jnp.float32) / 1000.0)[:, None]
    common = params["b_cross"][None, :] + ts

    wuT = jnp.transpose(params["w_unet"])
    cc = params["c_concat"].reshape(4, LL)
    base = jnp.einsum("ck,bkn->bcn", wuT[:, :4], latn)
    cc_term = wuT[:, 4:] @ cc
    pred_u = base + common[:, :, None]
    pred_c = base + cc_term[None] + (bias_core + common)[:, :, None]
    npred = pred_u + guidance_scale * (pred_c - pred_u)
    w = (1.0 - ac_t)[:, None, None]
    grad = jnp.nan_to_num(w * (npred - noise))
    return 0.5 * jnp.sum(grad * grad) / B


# ----------------------------------------------------------------------------
# Driver
# ----------------------------------------------------------------------------
if __name__ == "__main__":
    key = jax.random.PRNGKey(0)
    k_param, k_rgb, k_el, k_az, k_fwd = jax.random.split(key, 5)

    B = 2
    IMG = (128, 128)            # small stand-in for the module's 256x256 img_dim
    L = IMG[0] // 8
    num_train_timesteps = 1000
    guidance_scale = 3.0
    cond_elevation_deg = 30.0
    cond_azimuth_deg = 0.0
    min_step = int(num_train_timesteps * 0.02)
    max_step = int(num_train_timesteps * 0.98)

    # DDIM scaled_linear schedule (linear_start=0.00085, linear_end=0.012)
    betas = jnp.linspace(0.00085 ** 0.5, 0.012 ** 0.5,
                         num_train_timesteps, dtype=jnp.float32) ** 2
    alphas_cumprod = jnp.cumprod(1.0 - betas)

    ks = jax.random.split(k_param, 6)
    params = {
        # surrogate VAE patch encoder (8x8x3 -> 4)
        "w_enc": 0.02 * jax.random.normal(ks[0], (3 * 64, 4), jnp.float32),
        # cc_projection: nn.Linear(768 + 4, 768)
        "w_cc": 0.02 * jax.random.normal(ks[1], (772, 768), jnp.float32),
        "b_cc": jnp.zeros((768,), jnp.float32),
        # surrogate U-Net channel mixer + conditioning projection
        "w_unet": 0.05 * jax.random.normal(ks[2], (8, 4), jnp.float32),
        "w_cross": 0.02 * jax.random.normal(ks[3], (768, 4), jnp.float32),
        "b_cross": jnp.zeros((4,), jnp.float32),
        # synthesized conditioning embeddings (would come from prepare_embeddings)
        "c_crossattn": jax.random.normal(ks[4], (1, 1, 768), jnp.float32),
        "c_concat": jax.random.normal(ks[5], (1, 4, L, L), jnp.float32),
    }

    rgb = jax.random.uniform(k_rgb, (B, 96, 96, 3), jnp.float32)        # B H W C
    elevation = jax.random.uniform(k_el, (B,), jnp.float32, -30.0, 60.0)
    azimuth = jax.random.uniform(k_az, (B,), jnp.float32, 0.0, 360.0)

    cfg = dict(img_dim=IMG, guidance_scale=guidance_scale,
               cond_elevation_deg=cond_elevation_deg,
               cond_azimuth_deg=cond_azimuth_deg,
               alphas_cumprod=alphas_cumprod,
               min_step=min_step, max_step=max_step)

    fwd = jax.jit(functools.partial(stable_zero123_forward, **cfg))
    loss = fwd(params, rgb, elevation, azimuth, k_fwd)
    jax.block_until_ready(loss)
    assert loss.shape == () and bool(jnp.isfinite(loss))

    ref = _reference_loss(params, rgb, elevation, azimuth, k_fwd, **cfg)
    rel = abs(float(loss) - float(ref)) / max(abs(float(ref)), 1e-6)
    assert rel < 5e-2, f"pallas={float(loss)} ref={float(ref)} rel_err={rel}"
    print("KERNEL_OK")
</pallas_src>

<mosaic_0001>
module attributes {stable_mosaic.version = 11 : i64} {
  func.func @_sds_kernel(%arg0: i32, %arg1: i32, %arg2: memref<2x40xf32, #tpu.memory_space<smem>>, %arg3: memref<4x192xbf16, #tpu.memory_space<vmem>>, %arg4: memref<1x192x256xbf16, #tpu.memory_space<vmem>>, %arg5: memref<1x4x256xf32, #tpu.memory_space<vmem>>, %arg6: memref<4x256xf32, #tpu.memory_space<vmem>>, %arg7: memref<1x1x1xf32, #tpu.memory_space<vmem>>, %arg8: memref<1x256xf32, #tpu.memory_space<vmem>>) attributes {dimension_semantics = [#tpu.dimension_semantics<parallel>, #tpu.dimension_semantics<arbitrary>], iteration_bounds = array<i64: 2, 1>, scalar_prefetch = 0 : i64, scratch_operands = 1 : i64, tpu.core_type = #tpu.core_type<tc>, window_params = [{transform_indices = @transform_0, window_bounds = array<i64: 2, 40>}, {pipeline_mode = #tpu.pipeline_mode<synchronous>, transform_indices = @transform_1, window_bounds = array<i64: 4, 192>}, {transform_indices = @transform_2, window_bounds = array<i64: 1, 192, 256>}, {transform_indices = @transform_3, window_bounds = array<i64: 1, 4, 256>}, {transform_indices = @transform_4, window_bounds = array<i64: 4, 256>}, {transform_indices = @transform_5, window_bounds = array<i64: 1, 1, 1>}]} {
    %c0_i32 = arith.constant 0 : i32
    %0 = arith.cmpi eq, %arg1, %c0_i32 : i32
    %1 = arith.extui %0 : i1 to i32
    %c0_i32_0 = arith.constant 0 : i32
    %2 = arith.cmpi ne, %1, %c0_i32_0 : i32
    scf.if %2 {
      %cst_30 = arith.constant 0.000000e+00 : f32
      %275 = vector.broadcast %cst_30 : f32 to vector<1x256xf32>
      %c0_31 = arith.constant 0 : index
      %c0_32 = arith.constant 0 : index
      %276 = vector.load %arg8[%c0_31, %c0_32] : memref<1x256xf32, #tpu.memory_space<vmem>>, vector<1x256xf32>
      tpu.vector_store %arg8[%c0_31, %c0_32], %275 {strides = array<i32>} : memref<1x256xf32, #tpu.memory_space<vmem>>, vector<1x256xf32>,
    } else {
    }
    %c0 = arith.constant 0 : index
    %c0_1 = arith.constant 0 : index
    %3 = vector.load %arg3[%c0, %c0_1] : memref<4x192xbf16, #tpu.memory_space<vmem>>, vector<4x192xbf16>
    %c0_2 = arith.constant 0 : index
    %c0_3 = arith.constant 0 : index
    %c0_4 = arith.constant 0 : index
    %4 = vector.load %arg4[%c0_2, %c0_3, %c0_4] : memref<1x192x256xbf16, #tpu.memory_space<vmem>>, vector<1x192x256xbf16>
    %5 = vector.shape_cast %4 : vector<1x192x256xbf16> to vector<192x256xbf16>
    %cst = arith.constant dense<0.000000e+00> : vector<4x256xf32>
    %6 = tpu.matmul %3, %5, %cst {dimension_numbers = #tpu.dot_dimension_numbers<[1], [0], [0], [1], [0, 0, 1, 1], [], []>} : vector<4x192xbf16>, vector<192x256xbf16>, vector<4x256xf32> -> vector<4x256xf32>
    %c0_5 = arith.constant 0 : index
    %c0_6 = arith.constant 0 : index
    %c0_7 = arith.constant 0 : index
    %7 = vector.load %arg5[%c0_5, %c0_6, %c0_7] : memref<1x4x256xf32, #tpu.memory_space<vmem>>, vector<1x4x256xf32>
    %8 = vector.shape_cast %7 : vector<1x4x256xf32> to vector<4x256xf32>
    %c0_8 = arith.constant 0 : index
    %c0_9 = arith.constant 0 : index
    %9 = vector.load %arg6[%c0_8, %c0_9] : memref<4x256xf32, #tpu.memory_space<vmem>>, vector<4x256xf32>
    %10 = arith.index_cast %arg0 : i32 to index
    %c0_10 = arith.constant 0 : index
    %11 = memref.load %arg2[%10, %c0_10] : memref<2x40xf32, #tpu.memory_space<smem>>
    %cst_11 = arith.constant 0.000000e+00 : f32
    %12 = vector.broadcast %cst_11 : f32 to vector<1x256xf32>
    %13 = vector.extract_strided_slice %6 {offsets = [0, 0], sizes = [1, 256], strides = [1, 1]} : vector<4x256xf32> to vector<1x256xf32>
    %14 = vector.broadcast %11 : f32 to vector<1x256xf32>
    %15 = arith.mulf %14, %13 : vector<1x256xf32>
    %16 = arith.index_cast %arg0 : i32 to index
    %c4 = arith.constant 4 : index
    %17 = memref.load %arg2[%16, %c4] : memref<2x40xf32, #tpu.memory_space<smem>>
    %18 = vector.extract_strided_slice %8 {offsets = [0, 0], sizes = [1, 256], strides = [1, 1]} : vector<4x256xf32> to vector<1x256xf32>
    %19 = vector.broadcast %17 : f32 to vector<1x256xf32>
    %20 = arith.mulf %19, %18 : vector<1x256xf32>
    %21 = arith.addf %15, %20 : vector<1x256xf32>
    %22 = arith.index_cast %arg0 : i32 to index
    %c20 = arith.constant 20 : index
    %23 = memref.load %arg2[%22, %c20] : memref<2x40xf32, #tpu.memory_space<smem>>
    %24 = vector.extract_strided_slice %9 {offsets = [0, 0], sizes = [1, 256], strides = [1, 1]} : vector<4x256xf32> to vector<1x256xf32>
    %25 = vector.broadcast %23 : f32 to vector<1x256xf32>
    %26 = arith.mulf %25, %24 : vector<1x256xf32>
    %27 = arith.addf %21, %26 : vector<1x256xf32>
    %28 = arith.index_cast %arg0 : i32 to index
    %c5 = arith.constant 5 : index
    %29 = memref.load %arg2[%28, %c5] : memref<2x40xf32, #tpu.memory_space<smem>>
    %30 = vector.extract_strided_slice %8 {offsets = [1, 0], sizes = [1, 256], strides = [1, 1]} : vector<4x256xf32> to vector<1x256xf32>
    %31 = vector.broadcast %29 : f32 to vector<1x256xf32>
    %32 = arith.mulf %31, %30 : vector<1x256xf32>
    %33 = arith.addf %27, %32 : vector<1x256xf32>
    %34 = arith.index_cast %arg0 : i32 to index
    %c21 = arith.constant 21 : index
    %35 = memref.load %arg2[%34, %c21] : memref<2x40xf32, #tpu.memory_space<smem>>
    %36 = vector.extract_strided_slice %9 {offsets = [1, 0], sizes = [1, 256], strides = [1, 1]} : vector<4x256xf32> to vector<1x256xf32>
    %37 = vector.broadcast %35 : f32 to vector<1x256xf32>
    %38 = arith.mulf %37, %36 : vector<1x256xf32>
    %39 = arith.addf %33, %38 : vector<1x256xf32>
    %40 = arith.index_cast %arg0 : i32 to index
    %c6 = arith.constant 6 : index
    %41 = memref.load %arg2[%40, %c6] : memref<2x40xf32, #tpu.memory_space<smem>>
    %42 = vector.extract_strided_slice %8 {offsets = [2, 0], sizes = [1, 256], strides = [1, 1]} : vector<4x256xf32> to vector<1x256xf32>
    %43 = vector.broadcast %41 : f32 to vector<1x256xf32>
    %44 = arith.mulf %43, %42 : vector<1x256xf32>
    %45 = arith.addf %39, %44 : vector<1x256xf32>
    %46 = arith.index_cast %arg0 : i32 to index
    %c22 = arith.constant 22 : index
    %47 = memref.load %arg2[%46, %c22] : memref<2x40xf32, #tpu.memory_space<smem>>
    %48 = vector.extract_strided_slice %9 {offsets = [2, 0], sizes = [1, 256], strides = [1, 1]} : vector<4x256xf32> to vector<1x256xf32>
    %49 = vector.broadcast %47 : f32 to vector<1x256xf32>
    %50 = arith.mulf %49, %48 : vector<1x256xf32>
    %51 = arith.addf %45, %50 : vector<1x256xf32>
    %52 = arith.index_cast %arg0 : i32 to index
    %c7 = arith.constant 7 : index
    %53 = memref.load %arg2[%52, %c7] : memref<2x40xf32, #tpu.memory_space<smem>>
    %54 = vector.extract_strided_slice %8 {offsets = [3, 0], sizes = [1, 256], strides = [1, 1]} : vector<4x256xf32> to vector<1x256xf32>
    %55 = vector.broadcast %53 : f32 to vector<1x256xf32>
    %56 = arith.mulf %55, %54 : vector<1x256xf32>
    %57 = arith.addf %51, %56 : vector<1x256xf32>
    %58 = arith.index_cast %arg0 : i32 to index
    %c23 = arith.constant 23 : index
    %59 = memref.load %arg2[%58, %c23] : memref<2x40xf32, #tpu.memory_space<smem>>
    %60 = vector.extract_strided_slice %9 {offsets = [3, 0], sizes = [1, 256], strides = [1, 1]} : vector<4x256xf32> to vector<1x256xf32>
    %61 = vector.broadcast %59 : f32 to vector<1x256xf32>
    %62 = arith.mulf %61, %60 : vector<1x256xf32>
    %63 = arith.addf %57, %62 : vector<1x256xf32>
    %64 = arith.index_cast %arg0 : i32 to index
    %c36 = arith.constant 36 : index
    %65 = memref.load %arg2[%64, %c36] : memref<2x40xf32, #tpu.memory_space<smem>>
    %66 = vector.broadcast %65 : f32 to vector<1x256xf32>
    %67 = arith.addf %63, %66 : vector<1x256xf32>
    %68 = arith.cmpf one, %67, %67 : vector<1x256xf32>
    %cst_12 = arith.constant 0.000000e+00 : f32
    %69 = vector.broadcast %cst_12 : f32 to vector<1x256xf32>
    %70 = arith.select %68, %69, %67 : vector<1x256xi1>, vector<1x256xf32>
    %cst_13 = arith.constant -3.40282347E+38 : f32
    %cst_14 = arith.constant 3.40282347E+38 : f32
    %71 = vector.broadcast %cst_13 : f32 to vector<1x256xf32>
    %72 = arith.maximumf %71, %70 : vector<1x256xf32>
    %73 = vector.broadcast %cst_14 : f32 to vector<1x256xf32>
    %74 = arith.minimumf %73, %72 : vector<1x256xf32>
    %75 = arith.mulf %74, %74 : vector<1x256xf32>
    %76 = arith.addf %12, %75 : vector<1x256xf32>
    %77 = vector.extract_strided_slice %6 {offsets = [1, 0], sizes = [1, 256], strides = [1, 1]} : vector<4x256xf32> to vector<1x256xf32>
    %78 = vector.broadcast %11 : f32 to vector<1x256xf32>
    %79 = arith.mulf %78, %77 : vector<1x256xf32>
    %80 = arith.index_cast %arg0 : i32 to index
    %c8 = arith.constant 8 : index
    %81 = memref.load %arg2[%80, %c8] : memref<2x40xf32, #tpu.memory_space<smem>>
    %82 = vector.extract_strided_slice %8 {offsets = [0, 0], sizes = [1, 256], strides = [1, 1]} : vector<4x256xf32> to vector<1x256xf32>
    %83 = vector.broadcast %81 : f32 to vector<1x256xf32>
    %84 = arith.mulf %83, %82 : vector<1x256xf32>
    %85 = arith.addf %79, %84 : vector<1x256xf32>
    %86 = arith.index_cast %arg0 : i32 to index
    %c24 = arith.constant 24 : index
    %87 = memref.load %arg2[%86, %c24] : memref<2x40xf32, #tpu.memory_space<smem>>
    %88 = vector.extract_strided_slice %9 {offsets = [0, 0], sizes = [1, 256], strides = [1, 1]} : vector<4x256xf32> to vector<1x256xf32>
    %89 = vector.broadcast %87 : f32 to vector<1x256xf32>
    %90 = arith.mulf %89, %88 : vector<1x256xf32>
    %91 = arith.addf %85, %90 : vector<1x256xf32>
    %92 = arith.index_cast %arg0 : i32 to index
    %c9 = arith.constant 9 : index
    %93 = memref.load %arg2[%92, %c9] : memref<2x40xf32, #tpu.memory_space<smem>>
    %94 = vector.extract_strided_slice %8 {offsets = [1, 0], sizes = [1, 256], strides = [1, 1]} : vector<4x256xf32> to vector<1x256xf32>
    %95 = vector.broadcast %93 : f32 to vector<1x256xf32>
    %96 = arith.mulf %95, %94 : vector<1x256xf32>
    %97 = arith.addf %91, %96 : vector<1x256xf32>
    %98 = arith.index_cast %arg0 : i32 to index
    %c25 = arith.constant 25 : index
    %99 = memref.load %arg2[%98, %c25] : memref<2x40xf32, #tpu.memory_space<smem>>
    %100 = vector.extract_strided_slice %9 {offsets = [1, 0], sizes = [1, 256], strides = [1, 1]} : vector<4x256xf32> to vector<1x256xf32>
    %101 = vector.broadcast %99 : f32 to vector<1x256xf32>
    %102 = arith.mulf %101, %100 : vector<1x256xf32>
    %103 = arith.addf %97, %102 : vector<1x256xf32>
    %104 = arith.index_cast %arg0 : i32 to index
    %c10 = arith.constant 10 : index
    %105 = memref.load %arg2[%104, %c10] : memref<2x40xf32, #tpu.memory_space<smem>>
    %106 = vector.extract_strided_slice %8 {offsets = [2, 0], sizes = [1, 256], strides = [1, 1]} : vector<4x256xf32> to vector<1x256xf32>
    %107 = vector.broadcast %105 : f32 to vector<1x256xf32>
    %108 = arith.mulf %107, %106 : vector<1x256xf32>
    %109 = arith.addf %103, %108 : vector<1x256xf32>
    %110 = arith.index_cast %arg0 : i32 to index
    %c26 = arith.constant 26 : index
    %111 = memref.load %arg2[%110, %c26] : memref<2x40xf32, #tpu.memory_space<smem>>
    %112 = vector.extract_strided_slice %9 {offsets = [2, 0], sizes = [1, 256], strides = [1, 1]} : vector<4x256xf32> to vector<1x256xf32>
    %113 = vector.broadcast %111 : f32 to vector<1x256xf32>
    %114 = arith.mulf %113, %112 : vector<1x256xf32>
    %115 = arith.addf %109, %114 : vector<1x256xf32>
    %116 = arith.index_cast %arg0 : i32 to index
    %c11 = arith.constant 11 : index
    %117 = memref.load %arg2[%116, %c11] : memref<2x40xf32, #tpu.memory_space<smem>>
    %118 = vector.extract_strided_slice %8 {offsets = [3, 0], sizes = [1, 256], strides = [1, 1]} : vector<4x256xf32> to vector<1x256xf32>
    %119 = vector.broadcast %117 : f32 to vector<1x256xf32>
    %120 = arith.mulf %119, %118 : vector<1x256xf32>
    %121 = arith.addf %115, %120 : vector<1x256xf32>
    %122 = arith.index_cast %arg0 : i32 to index
    %c27 = arith.constant 27 : index
    %123 = memref.load %arg2[%122, %c27] : memref<2x40xf32, #tpu.memory_space<smem>>
    %124 = vector.extract_strided_slice %9 {offsets = [3, 0], sizes = [1, 256], strides = [1, 1]} : vector<4x256xf32> to vector<1x256xf32>
    %125 = vector.broadcast %123 : f32 to vector<1x256xf32>
    %126 = arith.mulf %125, %124 : vector<1x256xf32>
    %127 = arith.addf %121, %126 : vector<1x256xf32>
    %128 = arith.index_cast %arg0 : i32 to index
    %c37 = arith.constant 37 : index
    %129 = memref.load %arg2[%128, %c37] : memref<2x40xf32, #tpu.memory_space<smem>>
    %130 = vector.broadcast %129 : f32 to vector<1x256xf32>
    %131 = arith.addf %127, %130 : vector<1x256xf32>
    %132 = arith.cmpf one, %131, %131 : vector<1x256xf32>
    %cst_15 = arith.constant 0.000000e+00 : f32
    %133 = vector.broadcast %cst_15 : f32 to vector<1x256xf32>
    %134 = arith.select %132, %133, %131 : vector<1x256xi1>, vector<1x256xf32>
    %cst_16 = arith.constant -3.40282347E+38 : f32
    %cst_17 = arith.constant 3.40282347E+38 : f32
    %135 = vector.broadcast %cst_16 : f32 to vector<1x256xf32>
    %136 = arith.maximumf %135, %134 : vector<1x256xf32>
    %137 = vector.broadcast %cst_17 : f32 to vector<1x256xf32>
    %138 = arith.minimumf %137, %136 : vector<1x256xf32>
    %139 = arith.mulf %138, %138 : vector<1x256xf32>
    %140 = arith.addf %76, %139 : vector<1x256xf32>
    %141 = vector.extract_strided_slice %6 {offsets = [2, 0], sizes = [1, 256], strides = [1, 1]} : vector<4x256xf32> to vector<1x256xf32>
    %142 = vector.broadcast %11 : f32 to vector<1x256xf32>
    %143 = arith.mulf %142, %141 : vector<1x256xf32>
    %144 = arith.index_cast %arg0 : i32 to index
    %c12 = arith.constant 12 : index
    %145 = memref.load %arg2[%144, %c12] : memref<2x40xf32, #tpu.memory_space<smem>>
    %146 = vector.extract_strided_slice %8 {offsets = [0, 0], sizes = [1, 256], strides = [1, 1]} : vector<4x256xf32> to vector<1x256xf32>
    %147 = vector.broadcast %145 : f32 to vector<1x256xf32>
    %148 = arith.mulf %147, %146 : vector<1x256xf32>
    %149 = arith.addf %143, %148 : vector<1x256xf32>
    %150 = arith.index_cast %arg0 : i32 to index
    %c28 = arith.constant 28 : index
    %151 = memref.load %arg2[%150, %c28] : memref<2x40xf32, #tpu.memory_space<smem>>
    %152 = vector.extract_strided_slice %9 {offsets = [0, 0], sizes = [1, 256], strides = [1, 1]} : vector<4x256xf32> to vector<1x256xf32>
    %153 = vector.broadcast %151 : f32 to vector<1x256xf32>
    %154 = arith.mulf %153, %152 : vector<1x256xf32>
    %155 = arith.addf %149, %154 : vector<1x256xf32>
    %156 = arith.index_cast %arg0 : i32 to index
    %c13 = arith.constant 13 : index
    %157 = memref.load %arg2[%156, %c13] : memref<2x40xf32, #tpu.memory_space<smem>>
    %158 = vector.extract_strided_slice %8 {offsets = [1, 0], sizes = [1, 256], strides = [1, 1]} : vector<4x256xf32> to vector<1x256xf32>
    %159 = vector.broadcast %157 : f32 to vector<1x256xf32>
    %160 = arith.mulf %159, %158 : vector<1x256xf32>
    %161 = arith.addf %155, %160 : vector<1x256xf32>
    %162 = arith.index_cast %arg0 : i32 to index
    %c29 = arith.constant 29 : index
    %163 = memref.load %arg2[%162, %c29] : memref<2x40xf32, #tpu.memory_space<smem>>
    %164 = vector.extract_strided_slice %9 {offsets = [1, 0], sizes = [1, 256], strides = [1, 1]} : vector<4x256xf32> to vector<1x256xf32>
    %165 = vector.broadcast %163 : f32 to vector<1x256xf32>
    %166 = arith.mulf %165, %164 : vector<1x256xf32>
    %167 = arith.addf %161, %166 : vector<1x256xf32>
    %168 = arith.index_cast %arg0 : i32 to index
    %c14 = arith.constant 14 : index
    %169 = memref.load %arg2[%168, %c14] : memref<2x40xf32, #tpu.memory_space<smem>>
    %170 = vector.extract_strided_slice %8 {offsets = [2, 0], sizes = [1, 256], strides = [1, 1]} : vector<4x256xf32> to vector<1x256xf32>
    %171 = vector.broadcast %169 : f32 to vector<1x256xf32>
    %172 = arith.mulf %171, %170 : vector<1x256xf32>
    %173 = arith.addf %167, %172 : vector<1x256xf32>
    %174 = arith.index_cast %arg0 : i32 to index
    %c30 = arith.constant 30 : index
    %175 = memref.load %arg2[%174, %c30] : memref<2x40xf32, #tpu.memory_space<smem>>
    %176 = vector.extract_strided_slice %9 {offsets = [2, 0], sizes = [1, 256], strides = [1, 1]} : vector<4x256xf32> to vector<1x256xf32>
    %177 = vector.broadcast %175 : f32 to vector<1x256xf32>
    %178 = arith.mulf %177, %176 : vector<1x256xf32>
    %179 = arith.addf %173, %178 : vector<1x256xf32>
    %180 = arith.index_cast %arg0 : i32 to index
    %c15 = arith.constant 15 : index
    %181 = memref.load %arg2[%180, %c15] : memref<2x40xf32, #tpu.memory_space<smem>>
    %182 = vector.extract_strided_slice %8 {offsets = [3, 0], sizes = [1, 256], strides = [1, 1]} : vector<4x256xf32> to vector<1x256xf32>
    %183 = vector.broadcast %181 : f32 to vector<1x256xf32>
    %184 = arith.mulf %183, %182 : vector<1x256xf32>
    %185 = arith.addf %179, %184 : vector<1x256xf32>
    %186 = arith.index_cast %arg0 : i32 to index
    %c31 = arith.constant 31 : index
    %187 = memref.load %arg2[%186, %c31] : memref<2x40xf32, #tpu.memory_space<smem>>
    %188 = vector.extract_strided_slice %9 {offsets = [3, 0], sizes = [1, 256], strides = [1, 1]} : vector<4x256xf32> to vector<1x256xf32>
    %189 = vector.broadcast %187 : f32 to vector<1x256xf32>
    %190 = arith.mulf %189, %188 : vector<1x256xf32>
    %191 = arith.addf %185, %190 : vector<1x256xf32>
    %192 = arith.index_cast %arg0 : i32 to index
    %c38 = arith.constant 38 : index
    %193 = memref.load %arg2[%192, %c38] : memref<2x40xf32, #tpu.memory_space<smem>>
    %194 = vector.broadcast %193 : f32 to vector<1x256xf32>
    %195 = arith.addf %191, %194 : vector<1x256xf32>
    %196 = arith.cmpf one, %195, %195 : vector<1x256xf32>
    %cst_18 = arith.constant 0.000000e+00 : f32
    %197 = vector.broadcast %cst_18 : f32 to vector<1x256xf32>
    %198 = arith.select %196, %197, %195 : vector<1x256xi1>, vector<1x256xf32>
    %cst_19 = arith.constant -3.40282347E+38 : f32
    %cst_20 = arith.constant 3.40282347E+38 : f32
    %199 = vector.broadcast %cst_19 : f32 to vector<1x256xf32>
    %200 = arith.maximumf %199, %198 : vector<1x256xf32>
    %201 = vector.broadcast %cst_20 : f32 to vector<1x256xf32>
    %202 = arith.minimumf %201, %200 : vector<1x256xf32>
    %203 = arith.mulf %202, %202 : vector<1x256xf32>
    %204 = arith.addf %140, %203 : vector<1x256xf32>
    %205 = vector.extract_strided_slice %6 {offsets = [3, 0], sizes = [1, 256], strides = [1, 1]} : vector<4x256xf32> to vector<1x256xf32>
    %206 = vector.broadcast %11 : f32 to vector<1x256xf32>
    %207 = arith.mulf %206, %205 : vector<1x256xf32>
    %208 = arith.index_cast %arg0 : i32 to index
    %c16 = arith.constant 16 : index
    %209 = memref.load %arg2[%208, %c16] : memref<2x40xf32, #tpu.memory_space<smem>>
    %210 = vector.extract_strided_slice %8 {offsets = [0, 0], sizes = [1, 256], strides = [1, 1]} : vector<4x256xf32> to vector<1x256xf32>
    %211 = vector.broadcast %209 : f32 to vector<1x256xf32>
    %212 = arith.mulf %211, %210 : vector<1x256xf32>
    %213 = arith.addf %207, %212 : vector<1x256xf32>
    %214 = arith.index_cast %arg0 : i32 to index
    %c32 = arith.constant 32 : index
    %215 = memref.load %arg2[%214, %c32] : memref<2x40xf32, #tpu.memory_space<smem>>
    %216 = vector.extract_strided_slice %9 {offsets = [0, 0], sizes = [1, 256], strides = [1, 1]} : vector<4x256xf32> to vector<1x256xf32>
    %217 = vector.broadcast %215 : f32 to vector<1x256xf32>
    %218 = arith.mulf %217, %216 : vector<1x256xf32>
    %219 = arith.addf %213, %218 : vector<1x256xf32>
    %220 = arith.index_cast %arg0 : i32 to index
    %c17 = arith.constant 17 : index
    %221 = memref.load %arg2[%220, %c17] : memref<2x40xf32, #tpu.memory_space<smem>>
    %222 = vector.extract_strided_slice %8 {offsets = [1, 0], sizes = [1, 256], strides = [1, 1]} : vector<4x256xf32> to vector<1x256xf32>
    %223 = vector.broadcast %221 : f32 to vector<1x256xf32>
    %224 = arith.mulf %223, %222 : vector<1x256xf32>
    %225 = arith.addf %219, %224 : vector<1x256xf32>
    %226 = arith.index_cast %arg0 : i32 to index
    %c33 = arith.constant 33 : index
    %227 = memref.load %arg2[%226, %c33] : memref<2x40xf32, #tpu.memory_space<smem>>
    %228 = vector.extract_strided_slice %9 {offsets = [1, 0], sizes = [1, 256], strides = [1, 1]} : vector<4x256xf32> to vector<1x256xf32>
    %229 = vector.broadcast %227 : f32 to vector<1x256xf32>
    %230 = arith.mulf %229, %228 : vector<1x256xf32>
    %231 = arith.addf %225, %230 : vector<1x256xf32>
    %232 = arith.index_cast %arg0 : i32 to index
    %c18 = arith.constant 18 : index
    %233 = memref.load %arg2[%232, %c18] : memref<2x40xf32, #tpu.memory_space<smem>>
    %234 = vector.extract_strided_slice %8 {offsets = [2, 0], sizes = [1, 256], strides = [1, 1]} : vector<4x256xf32> to vector<1x256xf32>
    %235 = vector.broadcast %233 : f32 to vector<1x256xf32>
    %236 = arith.mulf %235, %234 : vector<1x256xf32>
    %237 = arith.addf %231, %236 : vector<1x256xf32>
    %238 = arith.index_cast %arg0 : i32 to index
    %c34 = arith.constant 34 : index
    %239 = memref.load %arg2[%238, %c34] : memref<2x40xf32, #tpu.memory_space<smem>>
    %240 = vector.extract_strided_slice %9 {offsets = [2, 0], sizes = [1, 256], strides = [1, 1]} : vector<4x256xf32> to vector<1x256xf32>
    %241 = vector.broadcast %239 : f32 to vector<1x256xf32>
    %242 = arith.mulf %241, %240 : vector<1x256xf32>
    %243 = arith.addf %237, %242 : vector<1x256xf32>
    %244 = arith.index_cast %arg0 : i32 to index
    %c19 = arith.constant 19 : index
    %245 = memref.load %arg2[%244, %c19] : memref<2x40xf32, #tpu.memory_space<smem>>
    %246 = vector.extract_strided_slice %8 {offsets = [3, 0], sizes = [1, 256], strides = [1, 1]} : vector<4x256xf32> to vector<1x256xf32>
    %247 = vector.broadcast %245 : f32 to vector<1x256xf32>
    %248 = arith.mulf %247, %246 : vector<1x256xf32>
    %249 = arith.addf %243, %248 : vector<1x256xf32>
    %250 = arith.index_cast %arg0 : i32 to index
    %c35 = arith.constant 35 : index
    %251 = memref.load %arg2[%250, %c35] : memref<2x40xf32, #tpu.memory_space<smem>>
    %252 = vector.extract_strided_slice %9 {offsets = [3, 0], sizes = [1, 256], strides = [1, 1]} : vector<4x256xf32> to vector<1x256xf32>
    %253 = vector.broadcast %251 : f32 to vector<1x256xf32>
    %254 = arith.mulf %253, %252 : vector<1x256xf32>
    %255 = arith.addf %249, %254 : vector<1x256xf32>
    %256 = arith.index_cast %arg0 : i32 to index
    %c39 = arith.constant 39 : index
    %257 = memref.load %arg2[%256, %c39] : memref<2x40xf32, #tpu.memory_space<smem>>
    %258 = vector.broadcast %257 : f32 to vector<1x256xf32>
    %259 = arith.addf %255, %258 : vector<1x256xf32>
    %260 = arith.cmpf one, %259, %259 : vector<1x256xf32>
    %cst_21 = arith.constant 0.000000e+00 : f32
    %261 = vector.broadcast %cst_21 : f32 to vector<1x256xf32>
    %262 = arith.select %260, %261, %259 : vector<1x256xi1>, vector<1x256xf32>
    %cst_22 = arith.constant -3.40282347E+38 : f32
    %cst_23 = arith.constant 3.40282347E+38 : f32
    %263 = vector.broadcast %cst_22 : f32 to vector<1x256xf32>
    %264 = arith.maximumf %263, %262 : vector<1x256xf32>
    %265 = vector.broadcast %cst_23 : f32 to vector<1x256xf32>
    %266 = arith.minimumf %265, %264 : vector<1x256xf32>
    %267 = arith.mulf %266, %266 : vector<1x256xf32>
    %268 = arith.addf %204, %267 : vector<1x256xf32>
    %c0_24 = arith.constant 0 : index
    %c0_25 = arith.constant 0 : index
    %269 = vector.load %arg8[%c0_24, %c0_25] : memref<1x256xf32, #tpu.memory_space<vmem>>, vector<1x256xf32>
    %270 = arith.addf %269, %268 : vector<1x256xf32>
    %c0_26 = arith.constant 0 : index
    %c0_27 = arith.constant 0 : index
    %271 = vector.load %arg8[%c0_26, %c0_27] : memref<1x256xf32, #tpu.memory_space<vmem>>, vector<1x256xf32>
    tpu.vector_store %arg8[%c0_26, %c0_27], %270 {strides = array<i32>} : memref<1x256xf32, #tpu.memory_space<vmem>>, vector<1x256xf32>,
    %c0_i32_28 = arith.constant 0 : i32
    %272 = arith.cmpi eq, %arg1, %c0_i32_28 : i32
    %273 = arith.extui %272 : i1 to i32
    %c0_i32_29 = arith.constant 0 : i32
    %274 = arith.cmpi ne, %273, %c0_i32_29 : i32
    scf.if %274 {
      %c0_30 = arith.constant 0 : index
      %c0_31 = arith.constant 0 : index
      %275 = vector.load %arg8[%c0_30, %c0_31] : memref<1x256xf32, #tpu.memory_space<vmem>>, vector<1x256xf32>
      %276 = vector.shape_cast %275 : vector<1x256xf32> to vector<1x1x256xf32>
      %cst_32 = arith.constant dense<0.000000e+00> : vector<1xf32>
      %277 = vector.multi_reduction <add>, %276, %cst_32 [1, 2] : vector<1x1x256xf32> to vector<1xf32>
      %278 = vector.shape_cast %277 : vector<1xf32> to vector<1x1x1xf32>
      %279 = vector.extract %278[0, 0, 0] : f32 from vector<1x1x1xf32>
      %280 = vector.broadcast %279 : f32 to vector<1x1x1xf32>
      %c0_33 = arith.constant 0 : index
      %c0_34 = arith.constant 0 : index
      %c0_35 = arith.constant 0 : index
      %281 = vector.load %arg7[%c0_33, %c0_34, %c0_35] : memref<1x1x1xf32, #tpu.memory_space<vmem>>, vector<1x1x1xf32>
      tpu.vector_store %arg7[%c0_33, %c0_34, %c0_35], %280 {strides = array<i32>} : memref<1x1x1xf32, #tpu.memory_space<vmem>>, vector<1x1x1xf32>,
    } else {
    }
    return
  }
  func.func @transform_0(%arg0: i32, %arg1: i32) -> (i32, i32) {
    %c0_i32 = arith.constant 0 : i32
    %c0_i32_0 = arith.constant 0 : i32
    %c0_i32_1 = arith.constant 0 : i32
    return %c0_i32, %c0_i32_0 : i32, i32
  }
  func.func @transform_1(%arg0: i32, %arg1: i32) -> (i32, i32) {
    %c0_i32 = arith.constant 0 : i32
    %c0_i32_0 = arith.constant 0 : i32
    %c0_i32_1 = arith.constant 0 : i32
    return %c0_i32, %c0_i32_0 : i32, i32
  }
  func.func @transform_2(%arg0: i32, %arg1: i32) -> (i32, i32, i32) {
    %c0_i32 = arith.constant 0 : i32
    %c0_i32_0 = arith.constant 0 : i32
    return %arg0, %c0_i32, %arg1 : i32, i32, i32
  }
  func.func @transform_3(%arg0: i32, %arg1: i32) -> (i32, i32, i32) {
    %c0_i32 = arith.constant 0 : i32
    %c0_i32_0 = arith.constant 0 : i32
    return %arg0, %c0_i32, %arg1 : i32, i32, i32
  }
  func.func @transform_4(%arg0: i32, %arg1: i32) -> (i32, i32) {
    %c0_i32 = arith.constant 0 : i32
    %c0_i32_0 = arith.constant 0 : i32
    return %c0_i32, %arg1 : i32, i32
  }
  func.func @transform_5(%arg0: i32, %arg1: i32) -> (i32, i32, i32) {
    %c0_i32 = arith.constant 0 : i32
    %c0_i32_0 = arith.constant 0 : i32
    %c0_i32_1 = arith.constant 0 : i32
    return %arg0, %c0_i32, %c0_i32_0 : i32, i32, i32
  }
}

</mosaic_0001>

<bundles_post_ra>
// kernel: stable_zero123_forward.21
= control target key start
LH: loop header
LB: loop body
LE: loop exit
PB: predicated region body
PF: predicated region fallthrough
CT: control target
= control target key end

     0   :  { %s2206_s0 = inlined_call_operand.vmem [shape: f32[2,40], index: 0, kind: input, shape index: {}]   ;;  %s2207_s1 = inlined_call_operand.vmem [shape: bf16[4,192], index: 1, kind: input, shape index: {}]   ;;  %s2208_s2 = inlined_call_operand.vmem [shape: bf16[2,192,256], index: 2, kind: input, shape index: {}]   ;;  %s2209_s3 = inlined_call_operand.vmem [shape: f32[2,4,256], index: 3, kind: input, shape index: {}]   ;;  %s2210_s4 = inlined_call_operand.vmem [shape: f32[4,256], index: 4, kind: input, shape index: {}]   ;;  %s2211_s5 = inlined_call_operand.vmem [shape: f32[2,1,1], index: 5, kind: output, shape index: {}]  }
   0x1   :  { %2215 = sst [smem:[#allocation9_spill]] %s2206_s0 }
   0x2   :  { %10 = vsyncpa [#allocation4], 0  ;;  %s1532_s18 = smov 0   ;;  %s1534_s19 = smov 0  }
   0x3   :  { %s1536_s20 = smov 0  }
   0x4 LB: > { %s1331_s21 = sadd.s32 4294967295, %s1497_s20   ;;  %s28_s22 = sadd.s32 1, %s1493_s19  ;;  %s1497_s20 = sphi %s1536_s20, %s16_s20   ;;  %s1493_s19 = sphi %s1534_s19, %s2281_s19   ;;  %s1489_s18 = sphi %s1532_s18, %s2280_s18  }
   0x5   : > { %p30_p0 = scmp.ge.s32.totalorder %s28_s22, 2  ;;  %p1333_p1 = scmp.ge.s32.totalorder %s1497_s20, 1 }
   0x6   : > { %p183_p2 = scmp.lt.s32.totalorder %s1497_s20, 3  ;;  %p1557_p4 = scmp.eq.s32.totalorder %s1331_s21, 0 }
   0x7   : > { %s2283_s22 = smov (%p30_p0, %s28_s22), 0  ;;  %s2218_s0 = sld [smem:[#allocation9_spill]] }
   0x8   : > { %p1553_p3 = pnand %p1333_p1, %p183_p2 }
   0xa   : > { %p1387_p5 = pneg %p1553_p3 }
   0xc   : > { %p1388_p6 = pnand %p1557_p4, %p1387_p5 }
   0xd   : > { %s196_s27 = sshll.u32 %s2218_s0, 4  ;;  %s197_s27 = int_to_ptr.vmem [resolvable:$true] %s196_s27 }
   0xe   : > { %s1456_s28 = scalar_lea.vmem %s197_s27, 32  ;;  %p1458_p8 = pneg %p1388_p6 }
   0xf   : > { %p1457_p7 = scmp.ne.s32.totalorder %s197_s27, %s1456_s28  ;;  %p1464_p11 = scmp.lt.s32.totalorder %s197_s27, %s197_s27 }
  0x10   : > { %p1465_p12 = scmp.lt.s32.totalorder %s1456_s28, %s1456_s28 }
  0x11   : > { %p1459_p9 = pnand %p1458_p8, %p1457_p7 }
  0x12   : > { %p1466_p13 = por %p1465_p12, %p1464_p11 }
  0x13   : > { %p1460_p10 = pneg %p1459_p9 }
  0x15   : > { %p1467_p0 = pnand %p1466_p13, %p1460_p10 }
  0x17   : > { %1470 = shalt.err (!%p1467_p0)
}
  0x18   : > { %s1499_s29 = smov [#allocation3]   ;;  %247 = sbr.rel (%p1553_p3) target bundleno = 555 (0x22b), region = 40 }
  0x19   : > { %1390 = dma.vmem_to_smem (!%p1388_p6), %s197_s27, 32, %s1499_s29, [#allocation4]  }
  0x1d   : > { %1484 = dma.done.wait (%p1557_p4), [#allocation4], 32  }
  0x1e   : > { %1486 = vsyncadd (%p1557_p4), [#allocation4], 4294967264 }
  0x1f   : > { %253 = sfence }
  0x20   : > { %p293_p1 = scmp.lt.s32.totalorder %s1489_s18, 1  ;;  %v1342_v0 = vld.sshfl [vmem:[%s2207_s1] sm:$0x33 pattern:$0x76325410]  ;;  %vm486_vm0 = vcmask 523264   ;;  %v326_v26 = vlaneseq }
  0x21   : > { %v364_v1 = vcombine.high %v1342_v0, %v1342_v0  ;;  %v2219_v27 = vmov 0  ;;  %v1500_v28 = vmov 0.0   ;;  %s1618_s12 = sshll.u32 %s1489_s18, 7  ;;  %v1671_v32 = vld [vmem:[%s2210_s4] sm:$0xff]  ;;  %vm1208_vm10 = vcmask 1040384  }
  0x22   : > { %s1579_s7 = scalar_select %p293_p1, %s1489_s18, 1  ;;  %vm1611_vm1 = vcmp.lt.s32.totalorder %v326_v26, 256  ;;  %v1657_v29 = vshrl.u32 %v326_v26, 7  ;;  %vm1222_vm11 = vcmask 0  }
  0x23   : > { %1367 = vmatprep.mubr.msk.bf16.mxu0 %vm486_vm0, %v364_v1  ;;  %v2220_v27 = vsel %vm1611_vm1, 4294967295, %v2219_v27  ;;  %330 = vst.msk [vmem:[#allocation2] sm:$0x3] %vm1611_vm1, %v1500_v28  ;;  %s538_s14 = sadd.s32 4, %s1618_s12  ;;  %s691_s15 = sadd.s32 8, %s1618_s12 }
  0x24   : > { %s1380_s8 = smul.u32 192, %s1579_s7  ;;  %2221 = vst [vmem:[#allocation6_spill] sm:$0xff] %v2220_v27  ;;  %s1379_s13 = sshll.u32 %s1579_s7, 3  ;;  %2222 = vst [vmem:[#allocation7_spill] sm:$0xff] %v1657_v29  ;;  %v1687_v38 = vsub.s32 0, %v1657_v29  ;;  %v1703_v42 = vsub.s32 4, %v1657_v29 }
  0x25   : > { %s310_s21 = scalar_lea.vmem %s2209_s3, %s1379_s13  ;;  %s1626_s18 = sld [smem:[#allocation3 + %s538_s14]]  ;;  %v1709_v44 = vsub.s32 1, %v1657_v29  ;;  %v1757_v60 = vsub.s32 2, %v1657_v29  ;;  %v1844_v26 = vsub.s32 7, %v1657_v29 }
  0x26   : > { %s1585_s11 = scalar_lea.vmem %s2208_s2, %s1380_s8  ;;  %s555_s23 = sadd.s32 20, %s1618_s12  ;;  %v1662_v30 = vld [vmem:[%s310_s21] sm:$0xff] }
  0x27   : > { %v1420_v2 = vld [vmem:[%s1585_s11 + $0x74] ss:$8 sps:$4 sm:$0xff]   ;;  %v1422_v3 = vld [vmem:[%s1585_s11 + $0x70] ss:$8 sps:$4 sm:$0xff]   ;;  %v1423_v4 = vld [vmem:[%s1585_s11 + $0x64] ss:$8 sps:$4 sm:$0xff]  }
  0x28   : > { %490 = vmatprep.subr.bf16.mxu0 %v1420_v2  ;;  %v1425_v5 = vld [vmem:[%s1585_s11 + $0x60] ss:$8 sps:$4 sm:$0xff]   ;;  %v1426_v6 = vld [vmem:[%s1585_s11 + $0x54] ss:$8 sps:$4 sm:$0xff]   ;;  %v1428_v7 = vld [vmem:[%s1585_s11 + $0x50] ss:$8 sps:$4 sm:$0xff]  }
  0x29   : > { %491 = vmatpush1.bf16.msra.mxu0 %v1422_v3  ;;  %v1429_v8 = vld [vmem:[%s1585_s11 + $0x44] ss:$8 sps:$4 sm:$0xff]   ;;  %v1431_v9 = vld [vmem:[%s1585_s11 + $0x40] ss:$8 sps:$4 sm:$0xff]   ;;  %v1432_v10 = vld [vmem:[%s1585_s11 + $0x34] ss:$8 sps:$4 sm:$0xff]  }
  0x2a   : > { %492 = vmatprep.subr.bf16.mxu0 %v1423_v4  ;;  %v1434_v11 = vld [vmem:[%s1585_s11 + $0x30] ss:$8 sps:$4 sm:$0xff]   ;;  %v1435_v12 = vld [vmem:[%s1585_s11 + $0x24] ss:$8 sps:$4 sm:$0xff]   ;;  %v1437_v13 = vld [vmem:[%s1585_s11 + $0x20] ss:$8 sps:$4 sm:$0xff]  }
  0x2b   : > { %v1438_v14 = vld [vmem:[%s1585_s11 + $0x14] ss:$8 sps:$4 sm:$0xff]   ;;  %v1440_v15 = vld [vmem:[%s1585_s11 + $0x10] ss:$8 sps:$4 sm:$0xff]   ;;  %v1441_v16 = vld [vmem:[%s1585_s11 + $0x4] ss:$8 sps:$4 sm:$0xff]   ;;  %v540_v31 = vstv %s1626_s18 }
  0x2c   : > { %v1443_v17 = vld [vmem:[%s1585_s11] ss:$8 sps:$4 sm:$0xff]   ;;  %v1444_v18 = vld [vmem:[%s1585_s11 + $0xb4] ss:$8 sps:$4 sm:$0xff]   ;;  %v1446_v19 = vld [vmem:[%s1585_s11 + $0xb0] ss:$8 sps:$4 sm:$0xff]   ;;  %v1684_v37 = vmul.f32 %v540_v31, %v1662_v30 }
  0x2d   : > { %493 = vmatpush1.bf16.msra.mxu0 %v1425_v5  ;;  %v1447_v20 = vld [vmem:[%s1585_s11 + $0xa4] ss:$8 sps:$4 sm:$0xff]   ;;  %v1449_v21 = vld [vmem:[%s1585_s11 + $0xa0] ss:$8 sps:$4 sm:$0xff]   ;;  %v1450_v22 = vld [vmem:[%s1585_s11 + $0x94] ss:$8 sps:$4 sm:$0xff]  }
  0x2e   : > { %494 = vmatprep.subr.bf16.mxu0 %v1426_v6  ;;  %v1452_v23 = vld [vmem:[%s1585_s11 + $0x90] ss:$8 sps:$4 sm:$0xff]   ;;  %v1453_v24 = vld [vmem:[%s1585_s11 + $0x84] ss:$8 sps:$4 sm:$0xff]   ;;  %v1455_v25 = vld [vmem:[%s1585_s11 + $0x80] ss:$8 sps:$4 sm:$0xff]   ;;  %v546_v48 = vrot.slane %v1684_v37, %v1687_v38 }
  0x2f   : > { %s572_s24 = sadd.s32 5, %s1618_s12  ;;  %s1630_s25 = sld [smem:[#allocation3 + %s691_s15]]  ;;  %v1783_v6 = vsub.s32 5, %v1657_v29 }
  0x30   : > { %s1633_s26 = sld [smem:[#allocation3 + %s1618_s12]]  ;;  %s708_s27 = sadd.s32 24, %s1618_s12 }
  0x31   : > { %495 = vmatpush1.bf16.msra.mxu0 %v1428_v7  ;;  %s1636_s28 = sld [smem:[#allocation3 + %s555_s23]]  ;;  %s589_s29 = sadd.s32 21, %s1618_s12 }
  0x32   : > { %496 = vmatprep.subr.bf16.mxu0 %v1429_v8  ;;  %s1639_s30 = sld [smem:[#allocation3 + %s572_s24]]  ;;  %s725_s6 = sadd.s32 9, %s1618_s12 }
  0x33   : > { %s606_s8 = sadd.s32 6, %s1618_s12  ;;  %s1643_s9 = sld [smem:[#allocation3 + %s708_s27]] }
  0x34   : > { %s1645_s10 = sld [smem:[#allocation3 + %s589_s29]]  ;;  %s742_s11 = sadd.s32 25, %s1618_s12 }
  0x35   : > { %497 = vmatpush1.bf16.msra.mxu0 %v1431_v9  ;;  %s623_s13 = sadd.s32 22, %s1618_s12  ;;  %s1649_s14 = sld [smem:[#allocation3 + %s725_s6]]  ;;  %v693_v34 = vstv %s1630_s25 }
  0x36   : > { %498 = vmatprep.subr.bf16.mxu0 %v1432_v10  ;;  %s1651_s15 = sld [smem:[#allocation3 + %s606_s8]]  ;;  %s759_s16 = sadd.s32 10, %s1618_s12  ;;  %v1697_v41 = vmul.f32 %v693_v34, %v1662_v30  ;;  %v535_v47 = vstv %s1633_s26 }
  0x37   : > { %s640_s17 = sadd.s32 7, %s1618_s12  ;;  %s1655_s23 = sld [smem:[#allocation3 + %s742_s11]]  ;;  %v557_v33 = vstv %s1636_s28 }
  0x38   : > { %s1659_s24 = sld [smem:[#allocation3 + %s623_s13]]  ;;  %s776_s27 = sadd.s32 26, %s1618_s12  ;;  %v574_v35 = vstv %s1639_s30  ;;  %v1693_v39 = vmul.f32 %v557_v33, %v1671_v32  ;;  %v699_v52 = vrot.slane %v1697_v41, %v1687_v38 }
  0x39   : > { %499 = vmatpush1.bf16.msra.mxu0 %v1434_v11  ;;  %s657_s29 = sadd.s32 23, %s1618_s12  ;;  %s1666_s6 = sld [smem:[#allocation3 + %s759_s16]]  ;;  %v710_v36 = vstv %s1643_s9  ;;  %v1706_v43 = vmul.f32 %v574_v35, %v1662_v30 }
  0x3a   : > { %500 = vmatprep.subr.bf16.mxu0 %v1435_v12  ;;  %s1674_s11 = sld [smem:[#allocation3 + %s640_s17]]  ;;  %s793_s13 = sadd.s32 11, %s1618_s12  ;;  %v591_v40 = vstv %s1645_s10  ;;  %v1713_v45 = vmul.f32 %v710_v36, %v1671_v32  ;;  %v563_v51 = vrot.slane %v1693_v39, %v1687_v38 }
  0x3b   : > { %s1680_s21 = sld [smem:[#allocation3 + %s776_s27]]  ;;  %s810_s18 = sadd.s32 27, %s1618_s12  ;;  %v727_v46 = vstv %s1649_s14  ;;  %v1725_v49 = vmul.f32 %v591_v40, %v1671_v32 }
  0x3c   : > { %s1689_s0 = sld [smem:[#allocation3 + %s657_s29]]  ;;  %s850_s28 = sadd.s32 12, %s1618_s12  ;;  %v608_v50 = vstv %s1651_s15  ;;  %v1738_v53 = vmul.f32 %v727_v46, %v1662_v30 }
  0x3d   : > { %501 = vmatpush1.bf16.msra.mxu0 %v1437_v13  ;;  %s1699_s25 = sld [smem:[#allocation3 + %s793_s13]]  ;;  %s867_s30 = sadd.s32 28, %s1618_s12  ;;  %v744_v57 = vstv %s1655_s23  ;;  %v1754_v59 = vmul.f32 %v608_v50, %v1662_v30  ;;  %v1802_v13 = vsub.s32 3, %v1657_v29 }
  0x3e   : > { %502 = vmatprep.subr.bf16.mxu0 %v1438_v14  ;;  %s674_s9 = sadd.s32 36, %s1618_s12  ;;  %s1716_s10 = sld [smem:[#allocation3 + %s810_s18]]  ;;  %v625_v61 = vstv %s1659_s24  ;;  %v1777_v5 = vmul.f32 %v744_v57, %v1671_v32 }
  0x3f   : > { %s827_s16 = sadd.s32 37, %s1618_s12  ;;  %s1719_s17 = sld [smem:[#allocation3 + %s850_s28]]  ;;  %v761_v62 = vstv %s1666_s6  ;;  %v1786_v7 = vmul.f32 %v625_v61, %v1671_v32 }
  0x40   : > { %s1728_s27 = sld [smem:[#allocation3 + %s867_s30]]  ;;  %s884_s29 = sadd.s32 13, %s1618_s12  ;;  %v1789_v8 = vmul.f32 %v761_v62, %v1662_v30 }
  0x41   : > { %503 = vmatpush1.bf16.msra.mxu0 %v1440_v15  ;;  %s1733_s14 = sld [smem:[#allocation3 + %s674_s9]]  ;;  %s901_s8 = sadd.s32 29, %s1618_s12  ;;  %v778_v1 = vstv %s1680_s21 }
  0x42   : > { %504 = vmatprep.subr.bf16.mxu0 %v1441_v16  ;;  %s1748_s15 = sld [smem:[#allocation3 + %s827_s16]]  ;;  %s918_s13 = sadd.s32 14, %s1618_s12  ;;  %v659_v3 = vstv %s1689_s0  ;;  %v1805_v14 = vmul.f32 %v778_v1, %v1671_v32 }
  0x43   : > { %s1761_s18 = sld [smem:[#allocation3 + %s884_s29]]  ;;  %s935_s23 = sadd.s32 30, %s1618_s12  ;;  %v795_v9 = vstv %s1699_s25  ;;  %v1811_v15 = vmul.f32 %v659_v3, %v1671_v32 }
  0x44   : > { %s1768_s28 = sld [smem:[#allocation3 + %s901_s8]]  ;;  %s952_s30 = sadd.s32 15, %s1618_s12  ;;  %v812_v10 = vstv %s1716_s10 }
  0x45   : > { %505 = vmatpush1.bf16.msra.mxu0 %v1443_v17  ;;  %s1779_s24 = sld [smem:[#allocation3 + %s918_s13]]  ;;  %s969_s6 = sadd.s32 31, %s1618_s12  ;;  %v852_v16 = vstv %s1719_s17  ;;  %v1818_v17 = vsub.s32 6, %v1657_v29 }
  0x46   : > { %514 = vmatprep.subr.bf16.mxu0 %v1444_v18  ;;  %s1009_s21 = sadd.s32 16, %s1618_s12  ;;  %s1807_s0 = sld [smem:[#allocation3 + %s952_s30]]  ;;  %v1851_v33 = vmul.f32 %v852_v16, %v1662_v30 }
  0x47   : > { %s1026_s25 = sadd.s32 32, %s1618_s12  ;;  %s1814_s9 = sld [smem:[#allocation3 + %s969_s6]] }
  0x48   : > { %s1043_s10 = sadd.s32 17, %s1618_s12  ;;  %s1831_s16 = sld [smem:[#allocation3 + %s1009_s21]] }
  0x49   : > { %515 = vmatpush2.bf16.msra.mxu0 %v1446_v19  ;;  %s1060_s17 = sadd.s32 33, %s1618_s12  ;;  %s1838_s29 = sld [smem:[#allocation3 + %s1026_s25]]  ;;  %v886_v40 = vstv %s1761_s18 }
  0x4a   : > { %516 = vmatprep.subr.bf16.mxu0 %v1447_v20  ;;  %v1825_v20 = vmul.f32 %v795_v9, %v1662_v30  ;;  %s1077_s8 = sadd.s32 18, %s1618_s12  ;;  %s1094_s13 = sadd.s32 34, %s1618_s12  ;;  %v903_v61 = vstv %s1768_s28  ;;  %v1891_v16 = vmul.f32 %v886_v40, %v1662_v30 }
  0x4b   : > { %s1111_s30 = sadd.s32 19, %s1618_s12  ;;  %s986_s6 = sadd.s32 38, %s1618_s12  ;;  %v920_v1 = vstv %s1779_s24  ;;  %v1903_v35 = vmul.f32 %v903_v61, %v1671_v32 }
  0x4c   : > { %s1875_s21 = sld [smem:[#allocation3 + %s1077_s8]]  ;;  %s1128_s25 = sadd.s32 35, %s1618_s12  ;;  %v1909_v40 = vmul.f32 %v920_v1, %v1662_v30  ;;  %v954_v50 = vstv %s1807_s0 }
  0x4d   : > { %517 = vmatpush2.bf16.msra.mxu0 %v1449_v21  ;;  %v1828_v21 = vmul.f32 %v812_v10, %v1671_v32  ;;  %s1881_s18 = sld [smem:[#allocation3 + %s1094_s13]]  ;;  %v858_v10 = vrot.slane %v1851_v33, %v1687_v38  ;;  %v971_v46 = vstv %s1814_s9 }
  0x4e   : > { %518 = vmatprep.subr.bf16.mxu0 %v1450_v22  ;;  %v869_v22 = vstv %s1728_s27  ;;  %s1853_s27 = sld [smem:[#allocation3 + %s1043_s10]]  ;;  %v1951_v31 = vmul.f32 %v971_v46, %v1671_v32 }
  0x4f   : > { %v1861_v36 = vmul.f32 %v869_v22, %v1671_v32  ;;  %s1893_s28 = sld [smem:[#allocation3 + %s1111_s30]] }
  0x50   : > { %s1906_s24 = sld [smem:[#allocation3 + %s986_s6]] }
  0x51   : > { %519 = vmatpush2.bf16.msra.mxu0 %v1452_v23  ;;  %s1911_s10 = sld [smem:[#allocation3 + %s1128_s25]]  ;;  %v1011_v23 = vstv %s1831_s16 }
  0x52   : > { %520 = vmatprep.subr.bf16.mxu0 %v1453_v24  ;;  %v1012_v24 = vmul.f32 %v1011_v23, %v1662_v30 }
  0x53   : > { %v1096_v1 = vstv %s1881_s18 }
  0x54   : > { %v1045_v11 = vstv %s1853_s27  ;;  %v1977_v23 = vmul.f32 %v1096_v1, %v1671_v32  ;;  %v1021_v1 = vrot.slane %v1012_v24, %v1703_v42 }
  0x55   : > { %521 = vmatpush2.bf16.msra.mxu0 %v1455_v25  ;;  %v1079_v25 = vstv %s1875_s21  ;;  %v1113_v63 = vstv %s1893_s28  ;;  %v1964_v18 = vmul.f32 %v1045_v11, %v1662_v30 }
  0x56   : > { %v1974_v34 = vmul.f32 %v1079_v25, %v1662_v30  ;;  %v1017_v25 = vrot.slane %v1012_v24, %v1687_v38 }
  0x57   : > { %v1051_v11 = vrot.slane %v1964_v18, %v1709_v44  ;;  %v1055_v2 = vrot.slane %v1964_v18, %v1783_v6 }
  0x58   : > { %523 = vmatmul.mubr.bf16.vlgmr.msra.gmra.mxu0 %v1342_v0  ;;  %v642_v0 = vstv %s1674_s11  ;;  %s1793_s11 = sld [smem:[#allocation3 + %s935_s23]]  ;;  %v1085_v24 = vrot.slane %v1974_v34, %v1757_v60 }
  0x59   : > { %v1799_v12 = vmul.f32 %v642_v0, %v1662_v30  ;;  %s1864_s23 = sld [smem:[#allocation3 + %s1060_s17]]  ;;  %v1028_v0 = vstv %s1838_s29 }
  0x5e   : > { %v937_v62 = vstv %s1793_s11  ;;  %s1145_s11 = sadd.s32 39, %s1618_s12 }
  0x5f   : > { %v1930_v61 = vmul.f32 %v937_v62, %v1671_v32  ;;  %v1944_v62 = vmul.f32 %v954_v50, %v1662_v30  ;;  %v1062_v9 = vstv %s1864_s23  ;;  %s1948_s12 = sld [smem:[#allocation3 + %s1145_s11]]  ;;  %v1029_v50 = vmul.f32 %v1028_v0, %v1671_v32 }
  0x60   : > { %v1967_v46 = vmul.f32 %v1062_v9, %v1671_v32  ;;  %v1130_v0 = vstv %s1911_s10  ;;  %v1983_v9 = vmul.f32 %v1113_v63, %v1662_v30 }
  0x61   : > { %v1034_v19 = vrot.slane %v1029_v50, %v1687_v38  ;;  %v1038_v3 = vrot.slane %v1029_v50, %v1703_v42  ;;  %v1998_v63 = vmul.f32 %v1130_v0, %v1671_v32  ;;  %v1102_v50 = vrot.slane %v1977_v23, %v1757_v60 }
  0x62   : > { %v1068_v30 = vrot.slane %v1967_v46, %v1709_v44  ;;  %v1119_v28 = vrot.slane %v1983_v9, %v1802_v13  ;;  %v1072_v32 = vrot.slane %v1967_v46, %v1783_v6  ;;  %v1089_v0 = vrot.slane %v1974_v34, %v1818_v17 }
  0x63   : > { %2223 = vst [vmem:[#allocation8_spill] sm:$0xff] %v1998_v63  ;;  %v1136_v46 = vrot.slane %v1998_v63, %v1802_v13 }
 0x118   : > { %v524_v4 = vpop.f32.mrf.mxu0 }
 0x119   : > { %v536_v22 = vmul.f32 %v535_v47, %v524_v4  ;;  %v1106_v4 = vrot.slane %v1977_v23, %v1818_v17  ;;  %v1123_v23 = vrot.slane %v1983_v9, %v1844_v26 }
 0x11a   : > { %v526_v58 = vpop.f32.mrf.mxu0 }
 0x11b   : > { %v553_v18 = vadd.f32 %v546_v48, %v536_v22  ;;  %v706_v55 = vadd.f32 %v699_v52, %v536_v22  ;;  %v865_v54 = vadd.f32 %v858_v10, %v536_v22  ;;  %v1024_v57 = vadd.f32 %v1017_v25, %v536_v22 }
 0x11c   : > { %v537_v34 = vmul.f32 %v535_v47, %v526_v58  ;;  %v528_v56 = vpop.f32.mrf.mxu0  ;;  %v2224_v10 = vrot.slane %v1713_v45, %v1687_v38  ;;  %v2225_v25 = vrot.slane %v1861_v36, %v1687_v38  ;;  %v2226_v58 = vrot.slane %v1684_v37, %v1703_v42 }
 0x11d   : > { %v570_v52 = vadd.f32 %v563_v51, %v553_v18  ;;  %v1041_v47 = vadd.f32 %v1034_v19, %v1024_v57  ;;  %v2227_v56 = vrot.slane %v1697_v41, %v1703_v42  ;;  %v2228_v51 = vrot.slane %v1851_v33, %v1703_v42 }
 0x11e   : > { %v723_v22 = vadd.f32 %v2224_v10, %v706_v55  ;;  %v882_v27 = vadd.f32 %v2225_v25, %v865_v54  ;;  %v554_v9 = vadd.f32 %v2226_v58, %v537_v34  ;;  %v1025_v29 = vadd.f32 %v1021_v1, %v537_v34  ;;  %v529_v63 = vpop.f32.mrf.mxu0 }
 0x11f   : > { %v707_v48 = vadd.f32 %v2227_v56, %v537_v34  ;;  %v866_v18 = vadd.f32 %v2228_v51, %v537_v34  ;;  %v2229_v55 = vrot.slane %v1706_v43, %v1709_v44  ;;  %v2230_v54 = vrot.slane %v1738_v53, %v1709_v44 }
 0x120   : > { %v2231_v37 = vrot.slane %v1891_v16, %v1709_v44  ;;  %v1058_v41 = vadd.f32 %v1051_v11, %v1041_v47  ;;  %v2232_v25 = vrot.slane %v1693_v39, %v1703_v42  ;;  %v2233_v1 = vrot.slane %v1713_v45, %v1703_v42 }
 0x121   : > { %v587_v10 = vadd.f32 %v2229_v55, %v570_v52  ;;  %v740_v19 = vadd.f32 %v2230_v54, %v723_v22  ;;  %v2234_v34 = vrot.slane %v1861_v36, %v1703_v42  ;;  %v1042_v58 = vadd.f32 %v1038_v3, %v1025_v29 }
 0x122   : > { %v899_v57 = vadd.f32 %v2231_v37, %v882_v27  ;;  %v571_v33 = vadd.f32 %v2232_v25, %v554_v9  ;;  %v724_v63 = vadd.f32 %v2233_v1, %v707_v48  ;;  %v2235_v22 = vrot.slane %v1725_v49, %v1709_v44 }
 0x123   : > { %v883_v52 = vadd.f32 %v2234_v34, %v866_v18  ;;  %v2236_v27 = vrot.slane %v1777_v5, %v1709_v44  ;;  %v2237_v39 = vrot.slane %v1903_v35, %v1709_v44  ;;  %v1075_v9 = vadd.f32 %v1068_v30, %v1058_v41 }
 0x124   : > { %v604_v56 = vadd.f32 %v2235_v22, %v587_v10  ;;  %v2238_v45 = vrot.slane %v1706_v43, %v1783_v6  ;;  %v2239_v29 = vrot.slane %v1738_v53, %v1783_v6  ;;  %v2240_v36 = vrot.slane %v1891_v16, %v1783_v6 }
 0x125   : > { %v757_v11 = vadd.f32 %v2236_v27, %v740_v19  ;;  %v916_v47 = vadd.f32 %v2237_v39, %v899_v57  ;;  %v1059_v51 = vadd.f32 %v1055_v2, %v1042_v58  ;;  %v2241_v18 = vrot.slane %v1754_v59, %v1757_v60 }
 0x126   : > { %v588_v48 = vadd.f32 %v2238_v45, %v571_v33  ;;  %v741_v42 = vadd.f32 %v2239_v29, %v724_v63  ;;  %v900_v3 = vadd.f32 %v2240_v36, %v883_v52  ;;  %v2242_v30 = vrot.slane %v1789_v8, %v1757_v60 }
 0x127   : > { %v621_v55 = vadd.f32 %v2241_v18, %v604_v56  ;;  %v2243_v43 = vrot.slane %v1909_v40, %v1757_v60  ;;  %v1092_v19 = vadd.f32 %v1085_v24, %v1075_v9  ;;  %v2244_v53 = vrot.slane %v1725_v49, %v1783_v6 }
 0x128   : > { %v774_v10 = vadd.f32 %v2242_v30, %v757_v11  ;;  %v2245_v2 = vrot.slane %v1777_v5, %v1783_v6  ;;  %v2246_v57 = vrot.slane %v1903_v35, %v1783_v6  ;;  %v1076_v25 = vadd.f32 %v1072_v32, %v1059_v51 }
 0x129   : > { %v933_v54 = vadd.f32 %v2243_v43, %v916_v47  ;;  %v605_v37 = vadd.f32 %v2244_v53, %v588_v48  ;;  %v2247_v33 = vrot.slane %v1786_v7, %v1757_v60  ;;  %v2248_v24 = vrot.slane %v1805_v14, %v1757_v60 }
 0x12a   : > { %v758_v16 = vadd.f32 %v2245_v2, %v741_v42  ;;  %v917_v41 = vadd.f32 %v2246_v57, %v900_v3  ;;  %v2249_v49 = vrot.slane %v1930_v61, %v1757_v60  ;;  %v1109_v52 = vadd.f32 %v1102_v50, %v1092_v19 }
 0x12b   : > { %v638_v1 = vadd.f32 %v2247_v33, %v621_v55  ;;  %v791_v63 = vadd.f32 %v2248_v24, %v774_v10  ;;  %v2250_v5 = vrot.slane %v1754_v59, %v1818_v17  ;;  %v2251_v6 = vrot.slane %v1789_v8, %v1818_v17 }
 0x12c   : > { %v950_v34 = vadd.f32 %v2249_v49, %v933_v54  ;;  %v2252_v32 = vrot.slane %v1909_v40, %v1818_v17  ;;  %v1093_v56 = vadd.f32 %v1089_v0, %v1076_v25  ;;  %v2253_v27 = vrot.slane %v1799_v12, %v1802_v13 }
 0x12d   : > { %v622_v58 = vadd.f32 %v2250_v5, %v605_v37  ;;  %v775_v35 = vadd.f32 %v2251_v6, %v758_v16  ;;  %v2254_v60 = vrot.slane %v1825_v20, %v1802_v13  ;;  %v2255_v59 = vrot.slane %v1944_v62, %v1802_v13 }
 0x12e   : > { %v934_v22 = vadd.f32 %v2252_v32, %v917_v41  ;;  %v655_v11 = vadd.f32 %v2253_v27, %v638_v1  ;;  %v1126_v39 = vadd.f32 %v1119_v28, %v1109_v52  ;;  %v2256_v40 = vrot.slane %v1786_v7, %v1818_v17  ;;  %v2272_v41 = vld [vmem:[#allocation8_spill] sm:$0xff] }
 0x12f   : > { %v808_v50 = vadd.f32 %v2254_v60, %v791_v63  ;;  %v967_v8 = vadd.f32 %v2255_v59, %v950_v34  ;;  %v2257_v47 = vrot.slane %v1805_v14, %v1818_v17  ;;  %v2258_v45 = vrot.slane %v1930_v61, %v1818_v17 }
 0x130   : > { %v639_v0 = vadd.f32 %v2256_v40, %v622_v58  ;;  %v1110_v29 = vadd.f32 %v1106_v4, %v1093_v56  ;;  %v2259_v42 = vrot.slane %v1811_v15, %v1802_v13  ;;  %v2260_v28 = vrot.slane %v1828_v21, %v1802_v13 }
 0x131   : > { %v792_v9 = vadd.f32 %v2257_v47, %v775_v35  ;;  %v951_v48 = vadd.f32 %v2258_v45, %v934_v22  ;;  %v2261_v7 = vrot.slane %v1951_v31, %v1802_v13  ;;  %v1143_v18 = vadd.f32 %v1136_v46, %v1126_v39 }
 0x132   : > { %v672_v36 = vadd.f32 %v2259_v42, %v655_v11  ;;  %v825_v3 = vadd.f32 %v2260_v28, %v808_v50  ;;  %v2262_v14 = vrot.slane %v1799_v12, %v1844_v26  ;;  %v2263_v17 = vrot.slane %v1825_v20, %v1844_v26 }
 0x133   : > { %v984_v51 = vadd.f32 %v2261_v7, %v967_v8  ;;  %v2264_v4 = vrot.slane %v1944_v62, %v1844_v26  ;;  %v1127_v10 = vadd.f32 %v1123_v23, %v1110_v29  ;;  %v2265_v43 = vstv %s1733_s14 }
 0x134   : > { %v656_v55 = vadd.f32 %v2262_v14, %v639_v0  ;;  %v809_v61 = vadd.f32 %v2263_v17, %v792_v9  ;;  %v677_v54 = vadd.f32 %v2265_v43, %v672_v36  ;;  %v2266_v19 = vstv %s1748_s15  ;;  %s320_s15 = scalar_lea.vmem %s2211_s5, %s1579_s7 }
 0x135   : > { %v968_v30 = vadd.f32 %v2264_v4, %v951_v48  ;;  %v830_v53 = vadd.f32 %v2266_v19, %v825_v3  ;;  %v2267_v13 = vstv %s1906_s24  ;;  %v2268_v46 = vstv %s1948_s12 }
 0x136   : > { %v989_v37 = vadd.f32 %v2267_v13, %v984_v51  ;;  %v1148_v2 = vadd.f32 %v2268_v46, %v1143_v18  ;;  %v2269_v12 = vrot.slane %v1811_v15, %v1844_v26  ;;  %v2270_v20 = vrot.slane %v1828_v21, %v1844_v26 }
 0x137   : > { %v2271_v23 = vrot.slane %v1951_v31, %v1844_v26  ;;  %v2273_v25 = vrot.slane %v2272_v41, %v1844_v26  ;;  %vm679_vm2 = vcmp.ne.f32.partialorder %v677_v54, %v677_v54  ;;  %vm832_vm3 = vcmp.ne.f32.partialorder %v830_v53, %v830_v53 }
 0x138   : > { %v673_v16 = vadd.f32 %v2269_v12, %v656_v55  ;;  %v826_v62 = vadd.f32 %v2270_v20, %v809_v61  ;;  %vm991_vm4 = vcmp.ne.f32.partialorder %v989_v37, %v989_v37  ;;  %vm1150_vm5 = vcmp.ne.f32.partialorder %v1148_v2, %v1148_v2 }
 0x139   : > { %v985_v57 = vadd.f32 %v2271_v23, %v968_v30  ;;  %v1144_v33 = vadd.f32 %v2273_v25, %v1127_v10  ;;  %v681_v15 = vsel %vm679_vm2, 0.0, %v677_v54  ;;  %v834_v1 = vsel %vm832_vm3, 0.0, %v830_v53 }
 0x13a   : > { %v993_v24 = vsel %vm991_vm4, 0.0, %v989_v37  ;;  %v1152_v21 = vsel %vm1150_vm5, 0.0, %v1148_v2  ;;  %v1369_v63 = vclamps-f32 %v681_v15, 3.4028235e+38  ;;  %v1371_v49 = vclamps-f32 %v834_v1, 3.4028235e+38 }
 0x13b   : > { %v1373_v34 = vclamps-f32 %v993_v24, 3.4028235e+38  ;;  %v2274_v52 = vmov %v2265_v43  ;;  %v2275_v5 = vmov %v2266_v19  ;;  %v2276_v6 = vmov %v2267_v13  ;;  %v2278_v19 = vld [vmem:[#allocation7_spill] sm:$0xff] }
 0x13c   : > { %v678_v31 = vadd.f32 %v2274_v52, %v673_v16  ;;  %v831_v58 = vadd.f32 %v2275_v5, %v826_v62  ;;  %v990_v35 = vadd.f32 %v2276_v6, %v985_v57  ;;  %v2277_v26 = vmov %v2268_v46  ;;  %v1168_v46 = vld [vmem:[#allocation2] sm:$0x3] }
 0x13d   : > { %v1149_v32 = vadd.f32 %v2277_v26, %v1144_v33  ;;  %v840_v22 = vmul.f32 %v1371_v49, %v1371_v49  ;;  %v1375_v56 = vclamps-f32 %v1152_v21, 3.4028235e+38  ;;  %v687_v11 = vmul.f32 %v1369_v63, %v1369_v63 }
 0x13e   : > { %vm680_vm6 = vcmp.ne.f32.partialorder %v678_v31, %v678_v31  ;;  %vm833_vm7 = vcmp.ne.f32.partialorder %v831_v58, %v831_v58  ;;  %vm992_vm8 = vcmp.ne.f32.partialorder %v990_v35, %v990_v35  ;;  %v999_v50 = vmul.f32 %v1373_v34, %v1373_v34 }
 0x13f   : > { %v682_v27 = vsel %vm680_vm6, 0.0, %v678_v31  ;;  %v844_v60 = vrot.slane %v840_v22, 1  ;;  %v835_v59 = vsel %vm833_vm7, 0.0, %v831_v58  ;;  %v994_v40 = vsel %vm992_vm8, 0.0, %v990_v35 }
 0x140   : > { %v1370_v8 = vclamps-f32 %v682_v27, 3.4028235e+38  ;;  %v1372_v39 = vclamps-f32 %v835_v59, 3.4028235e+38  ;;  %vm1151_vm9 = vcmp.ne.f32.partialorder %v1149_v32, %v1149_v32  ;;  %v1374_v0 = vclamps-f32 %v994_v40, 3.4028235e+38 }
 0x141   : > { %v1153_v47 = vsel %vm1151_vm9, 0.0, %v1149_v32  ;;  %v848_v9 = vadd.f32 %v844_v60, %v687_v11  ;;  %v1501_v29 = vmov 1966171168   ;;  %v1158_v36 = vmul.f32 %v1375_v56, %v1375_v56 }
 0x142   : > { %v841_v45 = vmul.f32 %v1372_v39, %v1372_v39  ;;  %v1376_v48 = vclamps-f32 %v1153_v47, 3.4028235e+38  ;;  %v1173_v42 = vunpack.c.l.s4 %v1501_v29  ;;  %v1000_v28 = vmul.f32 %v1374_v0, %v1374_v0 }
 0x143   : > { %v1003_v3 = vrot.slane %v999_v50, 2  ;;  %v688_v7 = vmul.f32 %v1370_v8, %v1370_v8  ;;  %v1162_v4 = vrot.slane %v1158_v36, 3 }
 0x144   : > { %v845_v51 = vrot.slane %v841_v45, 1  ;;  %v1159_v18 = vmul.f32 %v1376_v48, %v1376_v48  ;;  %v1004_v17 = vrot.slane %v1000_v28, 2  ;;  %v1174_v61 = vunpack.c.0.s8 %v1173_v42 }
 0x145   : > { %v1007_v14 = vadd.f32 %v1003_v3, %v848_v9 }
 0x146   : > { %v849_v55 = vadd.f32 %v845_v51, %v688_v7  ;;  %v1163_v10 = vrot.slane %v1159_v18, 3  ;;  %v1177_v53 = vsub.s32 %v1174_v61, %v2278_v19 }
 0x147   : > { %v1166_v43 = vadd.f32 %v1162_v4, %v1007_v14 }
 0x148   : > { %v1008_v30 = vadd.f32 %v1004_v17, %v849_v55 }
 0x14a   : > { %v1167_v54 = vadd.f32 %v1163_v10, %v1008_v30 }
 0x14c   : > { %v1171_v13 = vcombine.low %v1166_v43, %v1167_v54 }
 0x14e   : > { %v1178_v37 = vrot.slane %v1171_v13, %v1177_v53 }
 0x150   : > { %v1185_v2 = vrot.slane %v1178_v37, %v1177_v53 }
 0x152   : > { %v1187_v12 = vadd.f32 %v1185_v2, %v1168_v46 }
 0x154   : > { %1192 = vst.msk [vmem:[#allocation2] sm:$0x3] %vm1611_vm1, %v1187_v12 }
 0x15b   : > { %v1196_v20 = vld [vmem:[#allocation2] sm:$0x3] }
 0x15c   : > { %v1201_v62 = vrot.slane %v1196_v20, %v1687_v38  ;;  %v1205_v23 = vrot.slane %v1196_v20, %v1709_v44 }
 0x15e   : > { %v1209_v57 = vsel %vm1208_vm10, %v1201_v62, 0.0  ;;  %v1210_v41 = vsel %vm1208_vm10, %v1205_v23, 0.0 }
 0x15f   : > { %v1211_v25 = vadd.f32 %v1210_v41, %v1209_v57 }
 0x161   : > { %1212 = vadd.xlane.f32.xlu0 %v1211_v25 }
 0x1ea   : > { %v1213_v33 = vpop.xlane.xlu0 %1212 }
 0x1eb   : > { %v1214_v15 = vrot.slane %v1213_v33, 4 }
 0x1ed   : > { %v1215_v1 = vadd.f32 %v1214_v15, %v1213_v33 }
 0x1ef   : > { %v1216_v24 = vrot.slane %v1215_v1, 2 }
 0x1f1   : > { %v1217_v21 = vadd.f32 %v1216_v24, %v1215_v1 }
 0x1f3   : > { %v1218_v63 = vrot.slane %v1217_v21, 1 }
 0x1f5   : > { %v1219_v49 = vadd.f32 %v1218_v63, %v1217_v21 }
 0x1f7   : > { %1381 = vpush %v1219_v49 }
 0x228   : > { %s1382_s0 = spop %1381 }
 0x229   : > { %v1221_v38 = vstv %s1382_s0 }
 0x22a   : > { %1223 = vst.msk [vmem:[%s320_s15] sm:$0x1] %vm1222_vm11, %v1221_v38 }
 0x22b PF: > { %s16_s20 = sadd.s32 1, %s1497_s20   ;;  %s2280_s18 = smov %s1493_s19 }
 0x22c   : > { %p13_p2 = scmp.ge.s32.totalorder %s16_s20, 4   ;;  %s2281_s19 = smov %s2283_s22 }
 0x22e   :  { %15 = sbr.rel (!%p13_p2) target bundleno = 4 (0x4), region = 89 }
 0x233   :  { %1241 = vsyncpa [#allocation4], 1 }
 0x234   :  { %1243 = vsyncpa [#allocation4 + $0x1], 1 }

</bundles_post_ra>
